<compile_context>
chip_gen: v6e
topology: v6e:2x2x1
jax: 0.10.0
libtpu: 0.0.40
codegen_flags: <defaults>
</compile_context>

<pallas_src>
import jax
import jax.numpy as jnp
from jax.experimental import pallas as pl
from jax.experimental.pallas import tpu as pltpu


# ---------------------------------------------------------------------------
# Phase 1: per-batch global context   ctx = sum_n softmax_n(k) * v
# ---------------------------------------------------------------------------
def _ctx_kernel(x_ref, wkv_ref, bkv_ref, ctx_ref, m_sc, l_sc, s_sc):
    t = pl.program_id(1)
    hd = m_sc.shape[-1]

    @pl.when(t == 0)
    def _init():
        m_sc[...] = jnp.full_like(m_sc, -jnp.inf)
        l_sc[...] = jnp.zeros_like(l_sc)
        s_sc[...] = jnp.zeros_like(s_sc)

    # Native-dtype operands on the MXU, f32 accumulation.
    x = x_ref[0]                                               # (Tn, C)
    kv = jnp.dot(x, wkv_ref[...], preferred_element_type=jnp.float32)
    kv = kv + bkv_ref[...].astype(jnp.float32)                 # (Tn, 2*Hd)
    k = kv[:, :hd]                                             # (Tn, Hd)
    v = kv[:, hd:]                                             # (Tn, Hd)

    # Online softmax over the sequence (reduction across N-tiles).
    tile_max = jnp.max(k, axis=0, keepdims=True)               # (1, Hd)
    m_new = jnp.maximum(m_sc[...], tile_max)
    alpha = jnp.exp(m_sc[...] - m_new)                         # rescale old acc
    p = jnp.exp(k - m_new)                                     # (Tn, Hd)
    l_sc[...] = alpha * l_sc[...] + jnp.sum(p, axis=0, keepdims=True)
    s_sc[...] = alpha * s_sc[...] + jnp.sum(p * v, axis=0, keepdims=True)
    m_sc[...] = m_new

    @pl.when(t == pl.num_programs(1) - 1)
    def _finalize():
        inv_l = pl.reciprocal(l_sc[...], approx=True)          # EUP slot
        inv_l = inv_l * (2.0 - l_sc[...] * inv_l)              # Newton refine
        ctx_ref[0] = s_sc[...] * inv_l                         # (1, Hd), f32


# ---------------------------------------------------------------------------
# Phase 2: out_tile = sigmoid(x_tile @ Wq + bq) @ (ctx * Wo) + bo
# ---------------------------------------------------------------------------
def _output_kernel(x_ref, ctx_ref, wq_ref, bq_ref, wo_ref, bo_ref, o_ref):
    x = x_ref[0]                                               # (Tn, C)
    q = jnp.dot(x, wq_ref[...], preferred_element_type=jnp.float32)
    q = q + bq_ref[...].astype(jnp.float32)                    # (Tn, Hd)
    g = jax.nn.sigmoid(q)                                      # (Tn, Hd) f32

    # Fold ctx into Wo instead of gating the (Tn, Hd) activation.
    ctx_col = ctx_ref[0].astype(jnp.float32)                   # (Hd, 1)
    wo_scaled = wo_ref[...].astype(jnp.float32) * ctx_col      # (Hd, C)

    out = jnp.dot(g.astype(x.dtype), wo_scaled.astype(wo_ref.dtype),
                  preferred_element_type=jnp.float32)
    out = out + bo_ref[...].astype(jnp.float32)                # (Tn, C)
    o_ref[0] = out.astype(o_ref.dtype)


# ---------------------------------------------------------------------------
# Wrapper
# ---------------------------------------------------------------------------
def _choose_seq_tile(n, c, itemsize, *, max_rows=512, max_tile_bytes=4 << 20):
    """Largest multiple-of-8 divisor of n that keeps a (tile, C) buffer small."""
    cap = min(max_rows, max(8, max_tile_bytes // max(1, c * itemsize)))
    cap = max(8, (cap // 8) * 8)
    if n <= cap:
        return n
    for t in range(cap, 7, -8):
        if n % t == 0:
            return t
    return n  # TODO(synk): pad + mask the softmax for N with no nice divisor.


def aft_simple_forward(x, params, *, seq_tile=None):
    """x: (B, H, W, C) -> (B, H, W, C)"""
    B, H, W, C = x.shape
    N = H * W
    x_seq = x.reshape(B, N, C)

    wq, bq, wk, bk, wv, bv, wo, bo = params
    Hd = wq.shape[1]

    # Wrapper-side packing: fused K|V projection for phase 1.
    wkv = jnp.concatenate([wk, wv], axis=1)          # (C, 2*Hd)
    bkv = jnp.concatenate([bk, bv], axis=1)          # (1, 2*Hd)

    if seq_tile is None:
        seq_tile = _choose_seq_tile(N, C, x.dtype.itemsize)
    if N % seq_tile != 0:
        seq_tile = N
    n_tiles = N // seq_tile

    vmem_limit = 32 * 1024 * 1024  # safe on v5e/v6e/v7x, ample headroom here

    # ---- Phase 1: ctx (B, 1, Hd) -------------------------------------------
    ctx = pl.pallas_call(
        _ctx_kernel,
        out_shape=jax.ShapeDtypeStruct((B, 1, Hd), jnp.float32),
        grid_spec=pltpu.PrefetchScalarGridSpec(
            num_scalar_prefetch=0,
            grid=(B, n_tiles),
            in_specs=[
                pl.BlockSpec((1, seq_tile, C), lambda b, t: (b, t, 0)),   # x
                pl.BlockSpec((C, 2 * Hd), lambda b, t: (0, 0)),           # Wkv
                pl.BlockSpec((1, 2 * Hd), lambda b, t: (0, 0)),           # bkv
            ],
            out_specs=pl.BlockSpec((1, 1, Hd), lambda b, t: (b, 0, 0)),
            scratch_shapes=[pltpu.VMEM((1, Hd), jnp.float32)] * 3,
        ),
        compiler_params=pltpu.CompilerParams(
            dimension_semantics=("parallel", "arbitrary"),
            vmem_limit_bytes=vmem_limit),
    )(x_seq, wkv, bkv)

    # Tiny transpose in the wrapper so phase 2 needs no in-kernel transpose.
    ctx_col = jnp.swapaxes(ctx, 1, 2)                # (B, Hd, 1)

    # ---- Phase 2: gated output (B, N, C) -----------------------------------
    out_seq = pl.pallas_call(
        _output_kernel,
        out_shape=jax.ShapeDtypeStruct((B, N, C), x.dtype),
        grid_spec=pltpu.PrefetchScalarGridSpec(
            num_scalar_prefetch=0,
            grid=(B, n_tiles),
            in_specs=[
                pl.BlockSpec((1, seq_tile, C), lambda b, t: (b, t, 0)),   # x
                pl.BlockSpec((1, Hd, 1), lambda b, t: (b, 0, 0)),         # ctx
                pl.BlockSpec((C, Hd), lambda b, t: (0, 0)),               # Wq
                pl.BlockSpec((1, Hd), lambda b, t: (0, 0)),               # bq
                pl.BlockSpec((Hd, C), lambda b, t: (0, 0)),               # Wo
                pl.BlockSpec((1, C), lambda b, t: (0, 0)),                # bo
            ],
            out_specs=pl.BlockSpec((1, seq_tile, C), lambda b, t: (b, t, 0)),
        ),
        compiler_params=pltpu.CompilerParams(
            dimension_semantics=("parallel", "parallel"),
            vmem_limit_bytes=vmem_limit),
    )(x_seq, ctx_col, wq, bq, wo, bo)

    return out_seq.reshape(B, H, W, C)


# ---------------------------------------------------------------------------
# Params + pure-JAX reference
# ---------------------------------------------------------------------------
def init_params(key, dim, hidden_dim):
    """nn.Linear-style init; weights stored as (in_features, out_features)."""
    ks = jax.random.split(key, 8)

    def linear(kw, kb, fan_in, fan_out):
        bound = 1.0 / jnp.sqrt(fan_in)
        w = jax.random.uniform(kw, (fan_in, fan_out), jnp.float32, -bound, bound)
        b = jax.random.uniform(kb, (1, fan_out), jnp.float32, -bound, bound)
        return w, b

    wq, bq = linear(ks[0], ks[1], dim, hidden_dim)
    wk, bk = linear(ks[2], ks[3], dim, hidden_dim)
    wv, bv = linear(ks[4], ks[5], dim, hidden_dim)
    wo, bo = linear(ks[6], ks[7], hidden_dim, dim)
    return (wq, bq, wk, bk, wv, bv, wo, bo)


def aft_simple_reference(x, params):
    """Pure-JAX reference mirroring the PyTorch forward exactly."""
    B, H, W, C = x.shape
    wq, bq, wk, bk, wv, bv, wo, bo = params
    xs = x.reshape(B, -1, C)
    q = xs @ wq + bq
    k = xs @ wk + bk
    v = xs @ wv + bv
    ctx = jnp.sum(jax.nn.softmax(k, axis=1) * v, axis=1, keepdims=True)
    y = jax.nn.sigmoid(q) * ctx
    out = y @ wo + bo
    return out.reshape(B, H, W, C)


if __name__ == "__main__":
    key = jax.random.PRNGKey(0)
    k_x, k_p = jax.random.split(key)

    B, H, W, C = 2, 16, 16, 16      # dim = C = 16, N = 256
    hidden_dim = 32

    x = jax.random.normal(k_x, (B, H, W, C), dtype=jnp.float32)
    params = init_params(k_p, C, hidden_dim)

    # Force 4 sequence tiles (tile = 64) so the multi-tile online-softmax
    # reduction path is actually exercised, not just the single-tile case.
    out = aft_simple_forward(x, params, seq_tile=64)
    out = jax.block_until_ready(out)

    ref = aft_simple_reference(x, params)
    assert out.shape == (B, H, W, C)
    assert jnp.allclose(out, ref, atol=5e-5, rtol=5e-5), "mismatch vs reference"

    print("KERNEL_OK")
</pallas_src>

<mosaic_0001>
module attributes {stable_mosaic.version = 11 : i64} {
  func.func @_ctx_kernel(%arg0: i32, %arg1: i32, %arg2: memref<1x64x16xf32, #tpu.memory_space<vmem>>, %arg3: memref<16x64xf32, #tpu.memory_space<vmem>>, %arg4: memref<1x64xf32, #tpu.memory_space<vmem>>, %arg5: memref<1x1x32xf32, #tpu.memory_space<vmem>>, %arg6: memref<1x32xf32, #tpu.memory_space<vmem>>, %arg7: memref<1x32xf32, #tpu.memory_space<vmem>>, %arg8: memref<1x32xf32, #tpu.memory_space<vmem>>) attributes {dimension_semantics = [#tpu.dimension_semantics<parallel>, #tpu.dimension_semantics<arbitrary>], iteration_bounds = array<i64: 2, 4>, scalar_prefetch = 0 : i64, scratch_operands = 3 : i64, tpu.core_type = #tpu.core_type<tc>, window_params = [{transform_indices = @transform_0, window_bounds = array<i64: 1, 64, 16>}, {pipeline_mode = #tpu.pipeline_mode<synchronous>, transform_indices = @transform_1, window_bounds = array<i64: 16, 64>}, {pipeline_mode = #tpu.pipeline_mode<synchronous>, transform_indices = @transform_2, window_bounds = array<i64: 1, 64>}, {transform_indices = @transform_3, window_bounds = array<i64: 1, 1, 32>}]} {
    %c0_i32 = arith.constant 0 : i32
    %0 = arith.cmpi eq, %arg1, %c0_i32 : i32
    %1 = arith.extui %0 : i1 to i32
    %c0_i32_0 = arith.constant 0 : i32
    %2 = arith.cmpi ne, %1, %c0_i32_0 : i32
    scf.if %2 {
      %cst_25 = arith.constant 0xFF800000 : f32
      %39 = vector.broadcast %cst_25 : f32 to vector<1x32xf32>
      %c0_26 = arith.constant 0 : index
      %c0_27 = arith.constant 0 : index
      %40 = vector.load %arg6[%c0_26, %c0_27] : memref<1x32xf32, #tpu.memory_space<vmem>>, vector<1x32xf32>
      tpu.vector_store %arg6[%c0_26, %c0_27], %39 {strides = array<i32>} : memref<1x32xf32, #tpu.memory_space<vmem>>, vector<1x32xf32>,
      %cst_28 = arith.constant 0.000000e+00 : f32
      %41 = vector.broadcast %cst_28 : f32 to vector<1x32xf32>
      %c0_29 = arith.constant 0 : index
      %c0_30 = arith.constant 0 : index
      %42 = vector.load %arg7[%c0_29, %c0_30] : memref<1x32xf32, #tpu.memory_space<vmem>>, vector<1x32xf32>
      tpu.vector_store %arg7[%c0_29, %c0_30], %41 {strides = array<i32>} : memref<1x32xf32, #tpu.memory_space<vmem>>, vector<1x32xf32>,
      %cst_31 = arith.constant 0.000000e+00 : f32
      %43 = vector.broadcast %cst_31 : f32 to vector<1x32xf32>
      %c0_32 = arith.constant 0 : index
      %c0_33 = arith.constant 0 : index
      %44 = vector.load %arg8[%c0_32, %c0_33] : memref<1x32xf32, #tpu.memory_space<vmem>>, vector<1x32xf32>
      tpu.vector_store %arg8[%c0_32, %c0_33], %43 {strides = array<i32>} : memref<1x32xf32, #tpu.memory_space<vmem>>, vector<1x32xf32>,
    } else {
    }
    %c0 = arith.constant 0 : index
    %c0_1 = arith.constant 0 : index
    %c0_2 = arith.constant 0 : index
    %3 = vector.load %arg2[%c0, %c0_1, %c0_2] : memref<1x64x16xf32, #tpu.memory_space<vmem>>, vector<1x64x16xf32>
    %4 = vector.shape_cast %3 : vector<1x64x16xf32> to vector<64x16xf32>
    %c0_3 = arith.constant 0 : index
    %c0_4 = arith.constant 0 : index
    %5 = vector.load %arg3[%c0_3, %c0_4] : memref<16x64xf32, #tpu.memory_space<vmem>>, vector<16x64xf32>
    %cst = arith.constant dense<0.000000e+00> : vector<64x64xf32>
    %6 = tpu.matmul %4, %5, %cst {dimension_numbers = #tpu.dot_dimension_numbers<[1], [0], [0], [1], [0, 0, 1, 1], [], []>} : vector<64x16xf32>, vector<16x64xf32>, vector<64x64xf32> -> vector<64x64xf32>
    %c0_5 = arith.constant 0 : index
    %c0_6 = arith.constant 0 : index
    %7 = vector.load %arg4[%c0_5, %c0_6] : memref<1x64xf32, #tpu.memory_space<vmem>>, vector<1x64xf32>
    %8 = vector.broadcast %7 : vector<1x64xf32> to vector<64x64xf32>
    %9 = arith.addf %6, %8 : vector<64x64xf32>
    %10 = vector.extract_strided_slice %9 {offsets = [0, 0], sizes = [64, 32], strides = [1, 1]} : vector<64x64xf32> to vector<64x32xf32>
    %11 = vector.extract_strided_slice %9 {offsets = [0, 32], sizes = [64, 32], strides = [1, 1]} : vector<64x64xf32> to vector<64x32xf32>
    %cst_7 = arith.constant dense<0xFF800000> : vector<32xf32>
    %12 = vector.multi_reduction <maximumf>, %10, %cst_7 [0] : vector<64x32xf32> to vector<32xf32>
    %13 = vector.shape_cast %12 : vector<32xf32> to vector<1x32xf32>
    %c0_8 = arith.constant 0 : index
    %c0_9 = arith.constant 0 : index
    %14 = vector.load %arg6[%c0_8, %c0_9] : memref<1x32xf32, #tpu.memory_space<vmem>>, vector<1x32xf32>
    %15 = arith.maximumf %14, %13 : vector<1x32xf32>
    %c0_10 = arith.constant 0 : index
    %c0_11 = arith.constant 0 : index
    %16 = vector.load %arg6[%c0_10, %c0_11] : memref<1x32xf32, #tpu.memory_space<vmem>>, vector<1x32xf32>
    %17 = arith.subf %16, %15 : vector<1x32xf32>
    %18 = math.exp %17 : vector<1x32xf32>
    %19 = vector.broadcast %15 : vector<1x32xf32> to vector<64x32xf32>
    %20 = arith.subf %10, %19 : vector<64x32xf32>
    %21 = math.exp %20 : vector<64x32xf32>
    %c0_12 = arith.constant 0 : index
    %c0_13 = arith.constant 0 : index
    %22 = vector.load %arg7[%c0_12, %c0_13] : memref<1x32xf32, #tpu.memory_space<vmem>>, vector<1x32xf32>
    %23 = arith.mulf %18, %22 : vector<1x32xf32>
    %cst_14 = arith.constant dense<0.000000e+00> : vector<32xf32>
    %24 = vector.multi_reduction <add>, %21, %cst_14 [0] : vector<64x32xf32> to vector<32xf32>
    %25 = vector.shape_cast %24 : vector<32xf32> to vector<1x32xf32>
    %26 = arith.addf %23, %25 : vector<1x32xf32>
    %c0_15 = arith.constant 0 : index
    %c0_16 = arith.constant 0 : index
    %27 = vector.load %arg7[%c0_15, %c0_16] : memref<1x32xf32, #tpu.memory_space<vmem>>, vector<1x32xf32>
    tpu.vector_store %arg7[%c0_15, %c0_16], %26 {strides = array<i32>} : memref<1x32xf32, #tpu.memory_space<vmem>>, vector<1x32xf32>,
    %c0_17 = arith.constant 0 : index
    %c0_18 = arith.constant 0 : index
    %28 = vector.load %arg8[%c0_17, %c0_18] : memref<1x32xf32, #tpu.memory_space<vmem>>, vector<1x32xf32>
    %29 = arith.mulf %18, %28 : vector<1x32xf32>
    %30 = arith.mulf %21, %11 : vector<64x32xf32>
    %cst_19 = arith.constant dense<0.000000e+00> : vector<32xf32>
    %31 = vector.multi_reduction <add>, %30, %cst_19 [0] : vector<64x32xf32> to vector<32xf32>
    %32 = vector.shape_cast %31 : vector<32xf32> to vector<1x32xf32>
    %33 = arith.addf %29, %32 : vector<1x32xf32>
    %c0_20 = arith.constant 0 : index
    %c0_21 = arith.constant 0 : index
    %34 = vector.load %arg8[%c0_20, %c0_21] : memref<1x32xf32, #tpu.memory_space<vmem>>, vector<1x32xf32>
    tpu.vector_store %arg8[%c0_20, %c0_21], %33 {strides = array<i32>} : memref<1x32xf32, #tpu.memory_space<vmem>>, vector<1x32xf32>,
    %c0_22 = arith.constant 0 : index
    %c0_23 = arith.constant 0 : index
    %35 = vector.load %arg6[%c0_22, %c0_23] : memref<1x32xf32, #tpu.memory_space<vmem>>, vector<1x32xf32>
    tpu.vector_store %arg6[%c0_22, %c0_23], %15 {strides = array<i32>} : memref<1x32xf32, #tpu.memory_space<vmem>>, vector<1x32xf32>,
    %c3_i32 = arith.constant 3 : i32
    %36 = arith.cmpi eq, %arg1, %c3_i32 : i32
    %37 = arith.extui %36 : i1 to i32
    %c0_i32_24 = arith.constant 0 : i32
    %38 = arith.cmpi ne, %37, %c0_i32_24 : i32
    scf.if %38 {
      %c0_25 = arith.constant 0 : index
      %c0_26 = arith.constant 0 : index
      %39 = vector.load %arg7[%c0_25, %c0_26] : memref<1x32xf32, #tpu.memory_space<vmem>>, vector<1x32xf32>
      %40 = tpu.reciprocal %39 {approx = true} : vector<1x32xf32> -> vector<1x32xf32>
      %c0_27 = arith.constant 0 : index
      %c0_28 = arith.constant 0 : index
      %41 = vector.load %arg7[%c0_27, %c0_28] : memref<1x32xf32, #tpu.memory_space<vmem>>, vector<1x32xf32>
      %42 = arith.mulf %41, %40 : vector<1x32xf32>
      %cst_29 = arith.constant 2.000000e+00 : f32
      %43 = vector.broadcast %cst_29 : f32 to vector<1x32xf32>
      %44 = arith.subf %43, %42 : vector<1x32xf32>
      %45 = arith.mulf %40, %44 : vector<1x32xf32>
      %c0_30 = arith.constant 0 : index
      %c0_31 = arith.constant 0 : index
      %46 = vector.load %arg8[%c0_30, %c0_31] : memref<1x32xf32, #tpu.memory_space<vmem>>, vector<1x32xf32>
      %47 = arith.mulf %46, %45 : vector<1x32xf32>
      %c0_32 = arith.constant 0 : index
      %c0_33 = arith.constant 0 : index
      %c0_34 = arith.constant 0 : index
      %48 = vector.load %arg5[%c0_32, %c0_33, %c0_34] : memref<1x1x32xf32, #tpu.memory_space<vmem>>, vector<1x1x32xf32>
      %49 = vector.shape_cast %48 : vector<1x1x32xf32> to vector<1x32xf32>
      %50 = vector.shape_cast %47 : vector<1x32xf32> to vector<1x1x32xf32>
      tpu.vector_store %arg5[%c0_32, %c0_33, %c0_34], %50 {strides = array<i32>} : memref<1x1x32xf32, #tpu.memory_space<vmem>>, vector<1x1x32xf32>,
    } else {
    }
    return
  }
  func.func @transform_0(%arg0: i32, %arg1: i32) -> (i32, i32, i32) {
    %c0_i32 = arith.constant 0 : i32
    %c0_i32_0 = arith.constant 0 : i32
    return %arg0, %arg1, %c0_i32 : i32, i32, i32
  }
  func.func @transform_1(%arg0: i32, %arg1: i32) -> (i32, i32) {
    %c0_i32 = arith.constant 0 : i32
    %c0_i32_0 = arith.constant 0 : i32
    %c0_i32_1 = arith.constant 0 : i32
    return %c0_i32, %c0_i32_0 : i32, i32
  }
  func.func @transform_2(%arg0: i32, %arg1: i32) -> (i32, i32) {
    %c0_i32 = arith.constant 0 : i32
    %c0_i32_0 = arith.constant 0 : i32
    %c0_i32_1 = arith.constant 0 : i32
    return %c0_i32, %c0_i32_0 : i32, i32
  }
  func.func @transform_3(%arg0: i32, %arg1: i32) -> (i32, i32, i32) {
    %c0_i32 = arith.constant 0 : i32
    %c0_i32_0 = arith.constant 0 : i32
    %c0_i32_1 = arith.constant 0 : i32
    return %arg0, %c0_i32, %c0_i32_0 : i32, i32, i32
  }
}

</mosaic_0001>

<bundles_post_ra>
// kernel: tpu_custom_call.1
= control target key start
LH: loop header
LB: loop body
LE: loop exit
PB: predicated region body
PF: predicated region fallthrough
CT: control target
= control target key end

     0   :  { %8 = vsyncpa [#allocation6], 0  ;;  %s1051_s0 = inlined_call_operand.vmem [shape: f32[2,256,16], index: 0, kind: input, shape index: {}]   ;;  %s1052_s1 = inlined_call_operand.vmem [shape: f32[16,64], index: 1, kind: input, shape index: {}]   ;;  %s1053_s2 = inlined_call_operand.vmem [shape: f32[1,64], index: 2, kind: input, shape index: {}]   ;;  %s1054_s3 = inlined_call_operand.hbm [shape: f32[2,1,32], index: 3, kind: output, shape index: {}]  }
   0x1   :  { %10 = vsyncpa [#allocation6 + $0x1], 0  ;;  %s861_s12 = smov 0   ;;  %s863_s13 = smov 0  }
   0x2   :  { %s865_s14 = smov 0   ;;  %s867_s15 = smov 0  }
   0x3   :  { %s869_s16 = smov 0   ;;  %s871_s17 = smov 0  }
   0x4   :  { %s873_s18 = smov 0   ;;  %s875_s19 = smov 0  }
   0x5 LB: > { %s597_s20 = sadd.s32 4294967295, %s835_s19   ;;  %s598_s21 = sadd.s32 4294967294, %s835_s19   ;;  %s835_s19 = sphi %s875_s19, %s16_s19   ;;  %s831_s18 = sphi %s873_s18, %s1063_s18   ;;  %s827_s17 = sphi %s871_s17, %s1062_s17   ;;  %s823_s16 = sphi %s869_s16, %s1061_s16   ;;  %s819_s15 = sphi %s867_s15, %s1060_s15   ;;  %s815_s14 = sphi %s865_s14, %s1059_s14   ;;  %s811_s13 = sphi %s863_s13, %s1058_s13   ;;  %s807_s12 = sphi %s861_s12, %s1057_s12  }
   0x6   : > { %s25_s22 = sadd.s32 1, %s827_s17  ;;  %s28_s23 = sadd.s32 1, %s831_s18 }
   0x7   : > { %p26_p0 = scmp.ge.s32.totalorder %s25_s22, 4  ;;  %p115_p1 = scmp.ne.s32.totalorder %s815_s14, %s811_s13 }
   0x8   : > { %p116_p2 = scmp.eq.s32.totalorder %s597_s20, 7  ;;  %p121_p4 = scmp.ne.s32.totalorder %s811_s13, %s807_s12 }
   0x9   : > { %s1065_s22 = smov (%p26_p0, %s25_s22), 0  ;;  %s1067_s23 = smov (!%p26_p0, %s28_s23), %s831_s18 }
   0xa   : > { %p910_p3 = por %p116_p2, %p115_p1  ;;  %p30_p5 = scmp.ge.s32.totalorder %s1067_s23, 2 }
   0xb   : > { %p122_p6 = scmp.eq.s32.totalorder %s598_s21, 7  ;;  %p601_p7 = scmp.ge.s32.totalorder %s835_s19, 1 }
   0xc   : > { %p159_p8 = scmp.lt.s32.totalorder %s835_s19, 9  ;;  %s1069_s23 = smov (%p30_p5, %s1067_s23), 0 }
   0xd   : > { %p920_p9 = por %p122_p6, %p121_p4  ;;  %s102_s26 = ssub.s32 %s831_s18, %s1069_s23 }
   0xe   : > { %p160_p10 = pnand %p601_p7, %p159_p8  ;;  %s105_s27 = sadd.s32 1, %s815_s14 }
   0xf   : > { %p103_p11 = scmp.eq.s32.totalorder %s102_s26, 0  ;;  %s184_s29 = sand.u32 (!%p160_p10), 1, %s811_s13  }
  0x10   : > { %163 = sbr.rel (%p160_p10) target bundleno = 431 (0x1af), region = 32  ;;  %s602_s30 = sshll.u32 (!%p160_p10), %s819_s15, 3 }
  0x11   : > { %s928_s28 = scalar_select %p103_p11, %s815_s14, %s105_s27  }
  0x12   : > { %p187_p12 = scmp.lt.s32.totalorder (!%p160_p10), %s823_s16, 1  ;;  %p189_p13 = scmp.lt.s32.totalorder (!%p160_p10), %s602_s30, 31 }
  0x13   : > { %s941_s11 = scalar_lea.vmem (!%p160_p10), [#allocation5], %s184_s29  ;;  %p605_p0 = scmp.ne.s32.totalorder (!%p160_p10), %s819_s15, 0 }
  0x15   : > { %s188_s4 = scalar_select %p187_p12, %s823_s16, 1 }
  0x16   : > { %s1071_s30 = smov (!%p189_p13, %s602_s30), 31  ;;  %199 = sbr.rel (%p605_p0) target bundleno = 30 (0x1e), region = 36 }
  0x17   : > { %s603_s5 = sshll.u32 %s188_s4, 5 }
  0x18   : > { %s192_s6 = sadd.s32 %s603_s5, %s1071_s30 }
  0x19   : > { %s604_s7 = sshll.u32 %s192_s6, 3 }
  0x1a   : > { %s937_s10 = scalar_lea.vmem %s1051_s0, %s604_s7 }
  0x1b   : > { %vm200_vm0 = vcmask 253952   ;;  %v837_v0 = vmov -inf   ;;  %v838_v1 = vmov 0.0  }
  0x1c   : > { %201 = vst.msk [vmem:[#allocation2] sm:$0x1] %vm200_vm0, %v837_v0  ;;  %202 = vst.msk [vmem:[#allocation3] sm:$0x1] %vm200_vm0, %v838_v1 }
  0x1d   : > { %203 = vst.msk [vmem:[#allocation4] sm:$0x1] %vm200_vm0, %v838_v1 }
  0x1e PF: > { %v213_v2 = vld [vmem:[%s1052_s1 + $0x8] sm:$0xff]  ;;  %v212_v3 = vld [vmem:[%s1052_s1] sm:$0xff]  ;;  %vm221_vm1 = vcmask 130048   ;;  %v206_v8 = vld [vmem:[%s937_s10 + $0x10] sm:$0xff]  ;;  %vm351_vm2 = vcmask 261120   ;;  %s839_s5 = smov 96   ;;  %v379_v46 = vlaneseq }
  0x1f   : > { %629 = vmatprep.subr.mxu0 %v213_v2  ;;  %645 = vmatprep.subr.mxu1 %v213_v2  ;;  %v204_v4 = vld [vmem:[%s937_s10] sm:$0xff]  ;;  %v205_v6 = vld [vmem:[%s937_s10 + $0x8] sm:$0xff]  ;;  %v210_v9 = vld [vmem:[%s937_s10 + $0x30] sm:$0xff]  ;;  %vm432_vm3 = vcmask 253952   ;;  %p615_p1 = scmp.ne.s32.totalorder %s819_s15, 3 }
  0x20   : > { %630 = vmatpush3.msra.mxu0 %v213_v2  ;;  %647 = vmatpush3.msra.mxu1 %v213_v2  ;;  %v208_v5 = vld [vmem:[%s937_s10 + $0x20] sm:$0xff]  ;;  %v209_v7 = vld [vmem:[%s937_s10 + $0x28] sm:$0xff]  ;;  %v207_v10 = vld [vmem:[%s937_s10 + $0x18] sm:$0xff]  ;;  %v380_v49 = vshrl.u32 %v379_v46, 7 }
  0x21   : > { %631 = vmatprep.subr.mxu0 %v212_v3  ;;  %646 = vmatprep.subr.mxu1 %v212_v3  ;;  %v211_v11 = vld [vmem:[%s937_s10 + $0x38] sm:$0xff]  ;;  %v606_v12 = vld [vmem:[%s1053_s2] ss:$0 sm:$0xff] }
  0x22   : > { %632 = vmatpush3.msra.mxu0 %v212_v3  ;;  %648 = vmatpush3.msra.mxu1 %v212_v3  ;;  %v381_v53 = vsub.s32 0, %v380_v49 }
  0x23   : > { %633 = vmatprep.mubr.msk.f32.mxu0 %vm221_vm1, %v204_v4  ;;  %639 = vmatprep.mubr.msk.f32.mxu1 %vm221_vm1, %v208_v5  ;;  %v373_v51 = vld [vmem:[#allocation2] sm:$0x1] }
  0x24   : > { %634 = vmatmul.mubr.msk.f32.vlgmr.msra.gmra.mxu0 %vm221_vm1, %v205_v6  ;;  %640 = vmatmul.mubr.msk.f32.vlgmr.msra.gmra.mxu1 %vm221_vm1, %v209_v7 }
  0x25   : > { %636 = vmatprep.mubr.msk.f32.mxu0 %vm221_vm1, %v206_v8  ;;  %642 = vmatprep.mubr.msk.f32.mxu1 %vm221_vm1, %v210_v9 }
  0x28   : > { %637 = vmatmul.mubr.msk.f32.gmra.mxu0 %vm221_vm1, %v207_v10  ;;  %643 = vmatmul.mubr.msk.f32.gmra.mxu1 %vm221_vm1, %v211_v11 }
  0xe4   : > { %v635_v13 = vpop.f32.mrf.mxu0  ;;  %v641_v14 = vpop.f32.mrf.mxu1 }
  0xe5   : > { %v318_v15 = vadd.f32 %v635_v13, %v606_v12  ;;  %v969_v16 = vadd.f32 %v641_v14, %v606_v12 }
  0xe6   : > { %v312_v17 = vpop.f32.mrf.mxu0  ;;  %v332_v18 = vpop.f32.mrf.mxu1 }
  0xe7   : > { %v313_v19 = vadd.f32 %v606_v12, %v312_v17  ;;  %v333_v20 = vadd.f32 %v606_v12, %v332_v18  ;;  %v353_v27 = vsel %vm351_vm2, %v318_v15, -inf  ;;  %v358_v28 = vsel %vm351_vm2, %v969_v16, -inf }
  0xe8   : > { %v638_v21 = vpop.f32.mrf.mxu0  ;;  %v644_v22 = vpop.f32.mrf.mxu1  ;;  %v359_v38 = vmax.f32 %v353_v27, %v358_v28 }
  0xe9   : > { %v352_v23 = vsel %vm351_vm2, %v313_v19, -inf  ;;  %v356_v24 = vsel %vm351_vm2, %v333_v20, -inf  ;;  %v328_v25 = vadd.f32 %v638_v21, %v606_v12  ;;  %v348_v26 = vadd.f32 %v644_v22, %v606_v12  ;;  %444 = vrot.lane.b32.xlu0 %v313_v19, %s839_s5 }
  0xea   : > { %v322_v29 = vpop.f32.mrf.mxu0  ;;  %v342_v30 = vpop.f32.mrf.mxu1  ;;  %v357_v35 = vmax.f32 %v352_v23, %v356_v24 }
  0xeb   : > { %v355_v31 = vsel %vm351_vm2, %v328_v25, -inf  ;;  %v362_v32 = vsel %vm351_vm2, %v348_v26, -inf  ;;  %v323_v33 = vadd.f32 %v606_v12, %v322_v29  ;;  %v343_v34 = vadd.f32 %v606_v12, %v342_v30 }
  0xec   : > { %v363_v39 = vmax.f32 %v355_v31, %v362_v32  ;;  %v364_v41 = vmax.f32 %v357_v35, %v359_v38  ;;  %v408_v38 = vld [vmem:[#allocation3] sm:$0x1] }
  0xed   : > { %v354_v36 = vsel %vm351_vm2, %v323_v33, -inf  ;;  %v360_v37 = vsel %vm351_vm2, %v343_v34, -inf  ;;  %448 = vrot.lane.b32.xlu1 %v323_v33, %s839_s5  ;;  %446 = vrot.lane.b32.xlu0 %v318_v15, %s839_s5 }
  0xee   : > { %v361_v40 = vmax.f32 %v354_v36, %v360_v37 }
  0xf0   : > { %v365_v42 = vmax.f32 %v361_v40, %v363_v39 }
  0xf1   : > { %450 = vrot.lane.b32.xlu1 %v328_v25, %s839_s5  ;;  %452 = vrot.lane.b32.xlu0 %v333_v20, %s839_s5 }
  0xf2   : > { %v366_v43 = vmax.f32 %v364_v41, %v365_v42 }
  0xf4   : > { %v367_v44 = vrot.slane %v366_v43, 4 }
  0xf5   : > { %454 = vrot.lane.b32.xlu1 %v969_v16, %s839_s5  ;;  %456 = vrot.lane.b32.xlu0 %v343_v34, %s839_s5 }
  0xf6   : > { %v368_v45 = vmax.f32 %v366_v43, %v367_v44 }
  0xf8   : > { %v369_v47 = vrot.slane %v368_v45, 2 }
  0xf9   : > { %458 = vrot.lane.b32.xlu1 %v348_v26, %s839_s5 }
  0xfa   : > { %v370_v48 = vmax.f32 %v368_v45, %v369_v47 }
  0xfc   : > { %v371_v50 = vrot.slane %v370_v48, 1 }
  0xfe   : > { %v372_v52 = vmax.f32 %v370_v48, %v371_v50 }
 0x100   : > { %v374_v54 = vmax.f32 %v373_v51, %v372_v52 }
 0x102   : > { %v382_v55 = vrot.slane %v374_v54, %v381_v53  ;;  %499 = vst.msk [vmem:[#allocation2] sm:$0x1] %vm432_vm3, %v374_v54  ;;  %v375_v14 = vsub.f32 %v373_v51, %v374_v54 }
 0x104   : > { %v384_v56 = vsub.f32 %v313_v19, %v382_v55  ;;  %v386_v57 = vsub.f32 %v323_v33, %v382_v55  ;;  %v385_v58 = vsub.f32 %v318_v15, %v382_v55  ;;  %v387_v59 = vsub.f32 %v328_v25, %v382_v55 }
 0x105   : > { %v388_v63 = vsub.f32 %v333_v20, %v382_v55  ;;  %v389_v1 = vsub.f32 %v969_v16, %v382_v55  ;;  %v390_v2 = vsub.f32 %v343_v34, %v382_v55  ;;  %v391_v5 = vsub.f32 %v348_v26, %v382_v55 }
 0x106   : > { %v392_v60 = vmul.f32 1.442695, %v384_v56  ;;  %v396_v61 = vmul.f32 1.442695, %v386_v57  ;;  %v394_v62 = vmul.f32 1.442695, %v385_v58 }
 0x107   : > { %v398_v0 = vmul.f32 1.442695, %v387_v59  ;;  %v400_v3 = vmul.f32 1.442695, %v388_v63  ;;  %v402_v4 = vmul.f32 1.442695, %v389_v1 }
 0x108   : > { %723 = vpow2.f32 %v392_v60  ;;  %v404_v6 = vmul.f32 1.442695, %v390_v2  ;;  %v406_v7 = vmul.f32 1.442695, %v391_v5  ;;  %v376_v21 = vmul.f32 1.442695, %v375_v14 }
 0x109   : > { %725 = vpow2.f32 %v396_v61  ;;  %v434_v14 = vld [vmem:[#allocation4] sm:$0x1] }
 0x10a   : > { %727 = vpow2.f32 %v394_v62 }
 0x10b   : > { %729 = vpow2.f32 %v398_v0 }
 0x10c   : > { %731 = vpow2.f32 %v400_v3 }
 0x10d   : > { %733 = vpow2.f32 %v402_v4 }
 0x10e   : > { %735 = vpow2.f32 %v404_v6 }
 0x10f   : > { %737 = vpow2.f32 %v406_v7 }
 0x110   : > { %739 = vpow2.f32 %v376_v21 }
 0x115   : > { %v724_v8 = vpop.eup %723 }
 0x116   : > { %v726_v9 = vpop.eup %725  ;;  %v410_v10 = vsel %vm351_vm2, %v724_v8, 0.0 }
 0x117   : > { %v728_v11 = vpop.eup %727  ;;  %v413_v16 = vsel %vm351_vm2, %v726_v9, 0.0 }
 0x118   : > { %v411_v12 = vsel %vm351_vm2, %v728_v11, 0.0  ;;  %v730_v13 = vpop.eup %729 }
 0x119   : > { %v412_v15 = vadd.f32 %v411_v12, %v410_v10  ;;  %v732_v17 = vpop.eup %731  ;;  %v415_v19 = vsel %vm351_vm2, %v730_v13, 0.0 }
 0x11a   : > { %v734_v20 = vpop.eup %733  ;;  %v417_v23 = vsel %vm351_vm2, %v732_v17, 0.0 }
 0x11b   : > { %v414_v18 = vadd.f32 %v413_v16, %v412_v15  ;;  %v736_v24 = vpop.eup %735  ;;  %v419_v26 = vsel %vm351_vm2, %v734_v20, 0.0 }
 0x11c   : > { %v738_v27 = vpop.eup %737  ;;  %v421_v29 = vsel %vm351_vm2, %v736_v24, 0.0 }
 0x11d   : > { %v416_v22 = vadd.f32 %v415_v19, %v414_v18  ;;  %v423_v31 = vsel %vm351_vm2, %v738_v27, 0.0  ;;  %v740_v37 = vpop.eup %739 }
 0x11e   : > { %v409_v40 = vmul.f32 %v740_v37, %v408_v38  ;;  %v435_v16 = vmul.f32 %v740_v37, %v434_v14 }
 0x11f   : > { %v418_v25 = vadd.f32 %v417_v23, %v416_v22 }
 0x121   : > { %v420_v28 = vadd.f32 %v419_v26, %v418_v25 }
 0x123   : > { %v422_v30 = vadd.f32 %v421_v29, %v420_v28 }
 0x125   : > { %v424_v32 = vadd.f32 %v423_v31, %v422_v30 }
 0x127   : > { %v425_v33 = vrot.slane %v424_v32, 4 }
 0x129   : > { %v426_v34 = vadd.f32 %v425_v33, %v424_v32 }
 0x12b   : > { %v427_v35 = vrot.slane %v426_v34, 2 }
 0x12d   : > { %v428_v36 = vadd.f32 %v427_v35, %v426_v34 }
 0x12f   : > { %v429_v39 = vrot.slane %v428_v36, 1 }
 0x131   : > { %v430_v41 = vadd.f32 %v429_v39, %v428_v36 }
 0x133   : > { %v431_v42 = vadd.f32 %v430_v41, %v409_v40 }
 0x135   : > { %433 = vst.msk [vmem:[#allocation3] sm:$0x1] %vm432_vm3, %v431_v42 }
 0x15b   : > { %v445_v43 = vpop.permute.xlu0 %444 }
 0x15c   : > { %v468_v44 = vmul.f32 %v724_v8, %v445_v43 }
 0x15e   : > { %v476_v49 = vsel %vm351_vm2, %v468_v44, 0.0 }
 0x15f   : > { %v449_v45 = vpop.permute.xlu1 %448  ;;  %v447_v46 = vpop.permute.xlu0 %446 }
 0x160   : > { %v470_v47 = vmul.f32 %v726_v9, %v449_v45  ;;  %v469_v48 = vmul.f32 %v728_v11, %v447_v46 }
 0x162   : > { %v477_v50 = vsel %vm351_vm2, %v469_v48, 0.0  ;;  %v479_v54 = vsel %vm351_vm2, %v470_v47, 0.0 }
 0x163   : > { %v478_v51 = vadd.f32 %v477_v50, %v476_v49  ;;  %v451_v52 = vpop.permute.xlu1 %450  ;;  %v453_v53 = vpop.permute.xlu0 %452 }
 0x164   : > { %v471_v55 = vmul.f32 %v730_v13, %v451_v52  ;;  %v472_v56 = vmul.f32 %v732_v17, %v453_v53 }
 0x165   : > { %v480_v57 = vadd.f32 %v479_v54, %v478_v51 }
 0x166   : > { %v481_v58 = vsel %vm351_vm2, %v471_v55, 0.0  ;;  %v483_v62 = vsel %vm351_vm2, %v472_v56, 0.0 }
 0x167   : > { %v482_v59 = vadd.f32 %v481_v58, %v480_v57  ;;  %v455_v60 = vpop.permute.xlu1 %454  ;;  %v457_v61 = vpop.permute.xlu0 %456 }
 0x168   : > { %v473_v63 = vmul.f32 %v734_v20, %v455_v60  ;;  %v474_v0 = vmul.f32 %v736_v24, %v457_v61 }
 0x169   : > { %v484_v1 = vadd.f32 %v483_v62, %v482_v59 }
 0x16a   : > { %v485_v2 = vsel %vm351_vm2, %v473_v63, 0.0  ;;  %v487_v5 = vsel %vm351_vm2, %v474_v0, 0.0 }
 0x16b   : > { %v486_v3 = vadd.f32 %v485_v2, %v484_v1  ;;  %v459_v4 = vpop.permute.xlu1 %458 }
 0x16c   : > { %v475_v6 = vmul.f32 %v738_v27, %v459_v4 }
 0x16d   : > { %v488_v7 = vadd.f32 %v487_v5, %v486_v3 }
 0x16e   : > { %v489_v8 = vsel %vm351_vm2, %v475_v6, 0.0 }
 0x16f   : > { %v490_v9 = vadd.f32 %v489_v8, %v488_v7 }
 0x171   : > { %v491_v10 = vrot.slane %v490_v9, 4 }
 0x173   : > { %v492_v11 = vadd.f32 %v491_v10, %v490_v9 }
 0x175   : > { %v493_v12 = vrot.slane %v492_v11, 2 }
 0x177   : > { %v494_v13 = vadd.f32 %v493_v12, %v492_v11 }
 0x179   : > { %v495_v15 = vrot.slane %v494_v13, 1 }
 0x17b   : > { %v496_v17 = vadd.f32 %v495_v15, %v494_v13  ;;  %503 = sbr.rel (%p615_p1) target bundleno = 408 (0x198), region = 40 }
 0x17d   : > { %v497_v18 = vadd.f32 %v496_v17, %v435_v16 }
 0x17f   : > { %498 = vst.msk [vmem:[#allocation4] sm:$0x1] %vm432_vm3, %v497_v18 }
 0x180   : > { %v504_v19 = vld [vmem:[#allocation3] sm:$0x1] }
 0x181   : > { %741 = vrcp.f32 %v504_v19 }
 0x186   : > { %v509_v23 = vld [vmem:[#allocation4] sm:$0x1] }
 0x18e   : > { %v742_v20 = vpop.eup %741 }
 0x18f   : > { %v506_v21 = vmul.f32 %v742_v20, %v504_v19 }
 0x191   : > { %v507_v22 = vsub.f32 2.0, %v506_v21 }
 0x193   : > { %v508_v24 = vmul.f32 %v742_v20, %v507_v22 }
 0x195   : > { %v510_v25 = vmul.f32 %v509_v23, %v508_v24 }
 0x197   : > { %511 = vst.msk [vmem:[%s941_s11] sm:$0x1] %vm432_vm3, %v510_v25 }
 0x198 PF: > { %s616_s6 = sshll.u32 %s823_s16, 4  ;;  %s525_s9 = sshll.u32 %s941_s11, 4  ;;  %s526_s9 = int_to_ptr.vmem [resolvable:$true] %s525_s9 }
 0x199   : > { %s523_s8 = scalar_lea.hbm %s1054_s3, %s616_s6  ;;  %s513_s10 = scalar_lea.sflag [#allocation6], %s184_s29 }
 0x19a   : > { %s743_s20 = scalar_lea.vmem %s526_s9, 16  ;;  %s840_s21 = smov [#allocation5]  }
 0x19b   : > { %p744_p2 = scmp.ne.s32.totalorder %s526_s9, %s743_s20  ;;  %s747_s26 = sshll.u32 %s840_s21, 4  ;;  %s748_s26 = int_to_ptr.vmem [resolvable:$false] %s747_s26 }
 0x19c   : > { %s749_s27 = scalar_lea.vmem %s748_s26, 32  ;;  %p750_p6 = scmp.lt.s32.totalorder %s526_s9, %s748_s26 }
 0x19d   : > { %p745_p4 = pnand %p744_p2, %p910_p3  ;;  %p751_p7 = scmp.lt.s32.totalorder %s749_s27, %s743_s20 }
 0x19f   : > { %p746_p5 = pneg %p745_p4  ;;  %p752_p8 = por %p751_p7, %p750_p6 }
 0x1a1   : > { %p753_p10 = pnand %p752_p8, %p746_p5 }
 0x1a3   : > { %756 = shalt.err (!%p753_p10)
}
 0x1a4   : > { %s757_s16 = scalar_lea.hbm %s523_s8, 16  ;;  %s761_s30 = scalar_lea.hbm %s1054_s3, 32 }
 0x1a5   : > { %p758_p11 = scmp.ne.s32.totalorder %s523_s8, %s757_s16  ;;  %p762_p0 = scmp.lt.s32.totalorder %s523_s8, %s1054_s3 }
 0x1a6   : > { %p763_p1 = scmp.lt.s32.totalorder %s761_s30, %s757_s16 }
 0x1a7   : > { %p759_p12 = pnand %p758_p11, %p910_p3 }
 0x1a8   : > { %p764_p2 = por %p763_p1, %p762_p0 }
 0x1a9   : > { %p760_p13 = pneg %p759_p12 }
 0x1ab   : > { %p765_p4 = pnand %p764_p2, %p760_p13 }
 0x1ad   : > { %768 = shalt.err (!%p765_p4)
}
 0x1ae   : > { %649 = dma.vmem_to_hbm [thread:$0]  (%p910_p3), %s526_s9, 16, %s523_s8, %s513_s10  }
 0x1af PF: > { %p655_p5 = scmp.ge.s32.totalorder %s835_s19, 2  ;;  %s537_s6 = sand.u32 1, %s807_s12  }
 0x1b0   : > { %s538_s7 = scalar_lea.sflag [#allocation6], %s537_s6 }
 0x1b1   : > { %p652_p6 = pnand %p655_p5, %p920_p9 }
 0x1b3   : > { %p653_p7 = pneg %p652_p6 }
 0x1b5   : > { %802 = dma.done.wait (%p653_p7), %s538_s7, 16  }
 0x1b6   : > { %804 = vsyncadd (%p653_p7), %s538_s7, 4294967280  ;;  %s16_s19 = sadd.s32 1, %s835_s19   ;;  %s1057_s12 = smov %s811_s13 }
 0x1b7   : > { %p13_p8 = scmp.ge.s32.totalorder %s16_s19, 10   ;;  %s1058_s13 = smov %s815_s14 }
 0x1b8   : > { %s1059_s14 = smov %s928_s28  ;;  %s1060_s15 = smov %s827_s17 }
 0x1b9   : > { %s1061_s16 = smov %s831_s18  ;;  %s1062_s17 = smov %s1065_s22 }
 0x1ba   : > { %s1063_s18 = smov %s1069_s23  ;;  %15 = sbr.rel (!%p13_p8) target bundleno = 5 (0x5), region = 75 }
 0x1bf   :  { %542 = vsyncpa [#allocation6], 1 }
 0x1c0   :  { %544 = vsyncpa [#allocation6 + $0x1], 1 }

</bundles_post_ra>
